<compile_context>
chip_gen: v6e
topology: v6e:2x2x1
jax: 0.10.0
libtpu: 0.0.40
codegen_flags: <defaults>
</compile_context>

<pallas_src>
import jax
import jax.numpy as jnp
from jax.experimental import pallas as pl
from jax.experimental.pallas import tpu as pltpu


def _policy_head_kernel(h_ref, w_ref, b_ref, o_ref):
    # f32 h -> bf16 in-kernel (VPU, hidden under MXU/DMA); weight is pre-cast
    # bf16; f32 accumulate on the MXU; f32 bias add; store only the real
    # (unpadded) output columns.
    acc = jnp.dot(h_ref[...].astype(jnp.bfloat16), w_ref[...],
                  preferred_element_type=jnp.float32)
    o_ref[...] = (acc + b_ref[...])[:, :o_ref.shape[-1]]


def prepare_policy_head_params(weight_t, bias):
    """One-time prep: pad O 130->256 (lane-dense), cast weight to bf16.

    weight_t: (H, O) f32 (transposed nn.Linear weight); bias: (O,) f32.
    Returns (w_pad_bf16 (H, O_pad), b_pad_f32 (1, O_pad), out_dim).
    """
    H, O = weight_t.shape
    O_pad = ((O + 127) // 128) * 128                       # 130 -> 256
    w_p = jnp.pad(weight_t, ((0, 0), (0, O_pad - O))).astype(jnp.bfloat16)
    b_p = jnp.pad(bias.astype(jnp.float32), (0, O_pad - O)).reshape(1, O_pad)
    return w_p, b_p, O


def policy_head_forward(h, w_pad, b_pad, out_dim, *, tm=1024):
    """h: (B, H) f32; w_pad: (H, O_pad) bf16; b_pad: (1, O_pad) f32 -> (B, out_dim) f32."""
    B, H = h.shape
    O_pad = w_pad.shape[1]
    O = out_dim

    if B <= tm:
        # Tiny / decode batch: single gridless whole-array call. No pads, no
        # slices, no pipeline bookkeeping. Masked 128+2-lane store is noise.
        return pl.pallas_call(
            _policy_head_kernel,
            out_shape=jax.ShapeDtypeStruct((B, O), jnp.float32),
            in_specs=[pl.BlockSpec(memory_space=pltpu.MemorySpace.VMEM)
                      for _ in range(3)],
            out_specs=pl.BlockSpec(memory_space=pltpu.MemorySpace.VMEM),
        )(h, w_pad, b_pad)

    # Large batch: tile M. Clamp tm so there are >=2 tiles (lets "parallel"
    # shard the batch axis across v7x's 2 TensorCores; neutral on v5e/v6e).
    tm_eff = min(tm, max(256, ((pl.cdiv(B, 2) + 255) // 256) * 256))
    B_tiled = pl.cdiv(B, tm_eff) * tm_eff
    h_p = h if B_tiled == B else jnp.pad(h, ((0, B_tiled - B), (0, 0)))

    out = pl.pallas_call(
        _policy_head_kernel,
        out_shape=jax.ShapeDtypeStruct((B_tiled, O), jnp.float32),
        grid_spec=pl.GridSpec(
            grid=(B_tiled // tm_eff,),
            in_specs=[
                pl.BlockSpec((tm_eff, H), lambda i: (i, 0)),
                pl.BlockSpec((H, O_pad), lambda i: (0, 0)),
                pl.BlockSpec((1, O_pad), lambda i: (0, 0)),
            ],
            out_specs=pl.BlockSpec((tm_eff, O), lambda i: (i, 0)),
        ),
        compiler_params=pltpu.CompilerParams(
            dimension_semantics=("parallel",)),
    )(h_p, w_pad, b_pad)

    return out if B_tiled == B else out[:B]


def init_policy_head_params(key, hidden_dim=256, out_dim=5 * 26):
    # Deterministic init mimicking nn.Linear: U(-1/sqrt(H), 1/sqrt(H)).
    kw, kb = jax.random.split(key)
    bound = 1.0 / jnp.sqrt(jnp.float32(hidden_dim))
    # PyTorch stores weight as (out, in); we keep it transposed (in, out).
    weight_t = jax.random.uniform(kw, (hidden_dim, out_dim), jnp.float32,
                                  minval=-bound, maxval=bound)
    bias = jax.random.uniform(kb, (out_dim,), jnp.float32,
                              minval=-bound, maxval=bound)
    return weight_t, bias


if __name__ == "__main__":
    key = jax.random.PRNGKey(0)
    k_in, k_param, k_big = jax.random.split(key, 3)

    batch = 2
    hidden_dim = 256
    out_dim = 5 * 26  # 130

    h = jax.random.normal(k_in, (batch, hidden_dim), jnp.float32)
    # valid_indices_batch is unused by the PyTorch forward; kept for parity.
    valid_indices_batch = jnp.arange(batch, dtype=jnp.int32)

    weight_t, bias = init_policy_head_params(k_param, hidden_dim, out_dim)
    # One-time weight/bias prep (pad + bf16 cast), done at init, not per call.
    w_pad, b_pad, O = prepare_policy_head_params(weight_t, bias)

    # --- tiny-batch (decode) path ---
    pred_embed = policy_head_forward(h, w_pad, b_pad, O)
    pred_embed = jax.block_until_ready(pred_embed)
    assert pred_embed.shape == (batch, out_dim)

    # Loose check vs. the f32 reference (kernel uses bf16 MXU inputs).
    ref_f32 = h @ weight_t + bias
    assert jnp.allclose(pred_embed, ref_f32, atol=5e-2, rtol=5e-2)

    # Tight check vs. a bf16-input plain-JAX reference (same numerics path).
    ref_bf16 = (jnp.dot(h.astype(jnp.bfloat16), weight_t.astype(jnp.bfloat16),
                        preferred_element_type=jnp.float32)
                + bias.astype(jnp.float32))
    assert jnp.allclose(pred_embed, ref_bf16, atol=1e-3, rtol=1e-3)

    # --- batched (tiled, "parallel" grid) path, exercised with a small tile ---
    big_batch = 384
    h_big = jax.random.normal(k_big, (big_batch, hidden_dim), jnp.float32)
    pred_big = policy_head_forward(h_big, w_pad, b_pad, O, tm=128)
    pred_big = jax.block_until_ready(pred_big)
    assert pred_big.shape == (big_batch, out_dim)
    ref_big = (jnp.dot(h_big.astype(jnp.bfloat16),
                       weight_t.astype(jnp.bfloat16),
                       preferred_element_type=jnp.float32)
               + bias.astype(jnp.float32))
    assert jnp.allclose(pred_big, ref_big, atol=1e-3, rtol=1e-3)

    print("KERNEL_OK")
</pallas_src>

<mosaic_0001>
module attributes {stable_mosaic.version = 11 : i64} {
  func.func @_policy_head_kernel(%arg0: memref<2x256xf32, #tpu.memory_space<vmem>>, %arg1: memref<256x256xbf16, #tpu.memory_space<vmem>>, %arg2: memref<1x256xf32, #tpu.memory_space<vmem>>, %arg3: memref<2x130xf32, #tpu.memory_space<vmem>>) attributes {dimension_semantics = [], scalar_prefetch = 0 : i64, scratch_operands = 0 : i64, tpu.core_type = #tpu.core_type<tc>} {
    %c0 = arith.constant 0 : index
    %c0_0 = arith.constant 0 : index
    %0 = vector.load %arg0[%c0, %c0_0] : memref<2x256xf32, #tpu.memory_space<vmem>>, vector<2x256xf32>
    %1 = arith.truncf %0 : vector<2x256xf32> to vector<2x256xbf16>
    %c0_1 = arith.constant 0 : index
    %c0_2 = arith.constant 0 : index
    %2 = vector.load %arg1[%c0_1, %c0_2] : memref<256x256xbf16, #tpu.memory_space<vmem>>, vector<256x256xbf16>
    %cst = arith.constant dense<0.000000e+00> : vector<2x256xf32>
    %3 = tpu.matmul %1, %2, %cst {dimension_numbers = #tpu.dot_dimension_numbers<[1], [0], [0], [1], [0, 0, 1, 1], [], []>} : vector<2x256xbf16>, vector<256x256xbf16>, vector<2x256xf32> -> vector<2x256xf32>
    %c0_3 = arith.constant 0 : index
    %c0_4 = arith.constant 0 : index
    %4 = vector.load %arg2[%c0_3, %c0_4] : memref<1x256xf32, #tpu.memory_space<vmem>>, vector<1x256xf32>
    %5 = vector.broadcast %4 : vector<1x256xf32> to vector<2x256xf32>
    %6 = arith.addf %3, %5 : vector<2x256xf32>
    %7 = vector.extract_strided_slice %6 {offsets = [0, 0], sizes = [2, 130], strides = [1, 1]} : vector<2x256xf32> to vector<2x130xf32>
    %c0_5 = arith.constant 0 : index
    %c0_6 = arith.constant 0 : index
    %8 = vector.load %arg3[%c0_5, %c0_6] : memref<2x130xf32, #tpu.memory_space<vmem>>, vector<2x130xf32>
    tpu.vector_store %arg3[%c0_5, %c0_6], %7 {strides = array<i32>} : memref<2x130xf32, #tpu.memory_space<vmem>>, vector<2x130xf32>,
    return
  }
}

</mosaic_0001>

<bundles_post_ra>
// kernel: tpu_custom_call.1
= control target key start
LH: loop header
LB: loop body
LE: loop exit
PB: predicated region body
PF: predicated region fallthrough
CT: control target
= control target key end

     0   :  { %8 = vsyncpa [#allocation3], 0  ;;  %s522_s0 = inlined_call_operand.hbm [shape: f32[2,256], index: 0, kind: input, shape index: {}]   ;;  %s523_s1 = inlined_call_operand.hbm [shape: bf16[256,256], index: 1, kind: input, shape index: {}]   ;;  %s524_s2 = inlined_call_operand.vmem [shape: f32[1,256], index: 2, kind: input, shape index: {}]   ;;  %s525_s3 = inlined_call_operand.hbm [shape: f32[2,130], index: 3, kind: output, shape index: {}]  }
   0x1   :  { %9 = vsyncpa [#allocation6], 0 }
   0x2   :  { %10 = vsyncpa [#allocation4], 0  ;;  %s484_s12 = smov [#allocation2]   ;;  %s485_s14 = smov [#allocation5]  }
   0x3   :  { %s17_s13 = sshll.u32 %s484_s12, 4  ;;  %s26_s15 = sshll.u32 %s485_s14, 4  ;;  %s18_s13 = int_to_ptr.vmem [resolvable:$true] %s17_s13  ;;  %s27_s15 = int_to_ptr.vmem [resolvable:$true] %s26_s15 }
   0x4   :  { %s426_s16 = scalar_lea.vmem %s18_s13, 64  ;;  %p431_p1 = scmp.lt.s32.totalorder %s18_s13, %s18_s13 }
   0x5   :  { %p427_p0 = scmp.ne.s32.totalorder %s18_s13, %s426_s16  ;;  %p432_p2 = scmp.lt.s32.totalorder %s426_s16, %s426_s16 }
   0x7   :  { %p433_p3 = por %p432_p2, %p431_p1 }
   0x9   :  { %p434_p4 = pnand %p433_p3, %p427_p0 }
   0xb   :  { %437 = shalt.err (!%p434_p4)
}
   0xc   :  { %20 = dma.hbm_to_vmem [thread:$0]  %s522_s0, 64, %s18_s13, [#allocation3]  }
   0xd   :  { %s446_s19 = scalar_lea.vmem %s27_s15, 4096  ;;  %p451_p6 = scmp.lt.s32.totalorder %s27_s15, %s27_s15 }
   0xe   :  { %p447_p5 = scmp.ne.s32.totalorder %s27_s15, %s446_s19  ;;  %p452_p7 = scmp.lt.s32.totalorder %s446_s19, %s446_s19 }
  0x10   :  { %p453_p8 = por %p452_p7, %p451_p6 }
  0x12   :  { %p454_p9 = pnand %p453_p8, %p447_p5 }
  0x14   :  { %457 = shalt.err (!%p454_p9)
}
  0x15   :  { %s486_s20 = smov 128   ;;  %s487_s21 = smov 8  }
  0x16   :  { %32 = dma.hbm_to_vmem [thread:$0]  %s523_s1, 4096, %s27_s15, [#allocation6], %s486_s20, %s486_s20, %s487_s21  }
  0x17   :  { %478 = dma.done.wait [#allocation3], 64  }
  0x18   :  { %479 = vsyncadd [#allocation3], 4294967232 }
  0x19   :  { %480 = dma.done.wait [#allocation6], 4096  }
  0x1a   :  { %481 = vsyncadd [#allocation6], 4294963200  ;;  %v370_v0 = vld [vmem:[#allocation5 + $0x74] ss:$8 sps:$4 sm:$0xff]   ;;  %v372_v1 = vld [vmem:[#allocation5 + $0x70] ss:$8 sps:$4 sm:$0xff]   ;;  %v89_v36 = vlaneseq }
  0x1b   :  { %259 = vmatprep.subr.bf16.mxu0 %v370_v0  ;;  %v373_v2 = vld [vmem:[#allocation5 + $0x64] ss:$8 sps:$4 sm:$0xff]   ;;  %v375_v3 = vld [vmem:[#allocation5 + $0x60] ss:$8 sps:$4 sm:$0xff]   ;;  %v376_v4 = vld [vmem:[#allocation5 + $0x54] ss:$8 sps:$4 sm:$0xff]  }
  0x1c   :  { %260 = vmatpush1.bf16.msra.mxu0 %v372_v1  ;;  %v378_v5 = vld [vmem:[#allocation5 + $0x50] ss:$8 sps:$4 sm:$0xff]   ;;  %v379_v6 = vld [vmem:[#allocation5 + $0x44] ss:$8 sps:$4 sm:$0xff]   ;;  %v381_v7 = vld [vmem:[#allocation5 + $0x40] ss:$8 sps:$4 sm:$0xff]  }
  0x1d   :  { %261 = vmatprep.subr.bf16.mxu0 %v373_v2  ;;  %v382_v8 = vld [vmem:[#allocation5 + $0x34] ss:$8 sps:$4 sm:$0xff]   ;;  %v384_v9 = vld [vmem:[#allocation5 + $0x30] ss:$8 sps:$4 sm:$0xff]   ;;  %v385_v10 = vld [vmem:[#allocation5 + $0x24] ss:$8 sps:$4 sm:$0xff]  }
  0x1e   :  { %v387_v11 = vld [vmem:[#allocation5 + $0x20] ss:$8 sps:$4 sm:$0xff]   ;;  %v388_v12 = vld [vmem:[#allocation5 + $0x14] ss:$8 sps:$4 sm:$0xff]   ;;  %v390_v15 = vld [vmem:[#allocation5 + $0x10] ss:$8 sps:$4 sm:$0xff]  }
  0x1f   :  { %v331_v13 = vld.sshfl [vmem:[#allocation2] sm:$0x33 pattern:$0x76325410]  ;;  %v391_v16 = vld [vmem:[#allocation5 + $0x4] ss:$8 sps:$4 sm:$0xff]  }
  0x20   :  { %262 = vmatpush1.bf16.msra.mxu0 %v375_v3  ;;  %v50_v14 = vcombine.high %v331_v13, %v331_v13  ;;  %v393_v18 = vld [vmem:[#allocation5] ss:$8 sps:$4 sm:$0xff]   ;;  %v394_v19 = vld [vmem:[#allocation5 + $0xf4] ss:$8 sps:$4 sm:$0xff]   ;;  %v396_v20 = vld [vmem:[#allocation5 + $0xf0] ss:$8 sps:$4 sm:$0xff]   ;;  %v53_v35 = vpack.c.bf16 %v331_v13, %v331_v13 }
  0x21   :  { %263 = vmatprep.subr.bf16.mxu0 %v376_v4  ;;  %v397_v21 = vld [vmem:[#allocation5 + $0xe4] ss:$8 sps:$4 sm:$0xff]   ;;  %v399_v22 = vld [vmem:[#allocation5 + $0xe0] ss:$8 sps:$4 sm:$0xff]   ;;  %v400_v23 = vld [vmem:[#allocation5 + $0xd4] ss:$8 sps:$4 sm:$0xff]  }
  0x22   :  { %v54_v17 = vpack.c.bf16 %v50_v14, %v50_v14  ;;  %v402_v24 = vld [vmem:[#allocation5 + $0xd0] ss:$8 sps:$4 sm:$0xff]   ;;  %v403_v25 = vld [vmem:[#allocation5 + $0xc4] ss:$8 sps:$4 sm:$0xff]   ;;  %v405_v26 = vld [vmem:[#allocation5 + $0xc0] ss:$8 sps:$4 sm:$0xff]  }
  0x23   :  { %v406_v27 = vld [vmem:[#allocation5 + $0xb4] ss:$8 sps:$4 sm:$0xff]   ;;  %v408_v28 = vld [vmem:[#allocation5 + $0xb0] ss:$8 sps:$4 sm:$0xff]   ;;  %v409_v29 = vld [vmem:[#allocation5 + $0xa4] ss:$8 sps:$4 sm:$0xff]  }
  0x24   :  { %264 = vmatpush1.bf16.msra.mxu0 %v378_v5  ;;  %291 = vmatprep.mubr.bf16.mxu0 %v54_v17  ;;  %v411_v30 = vld [vmem:[#allocation5 + $0xa0] ss:$8 sps:$4 sm:$0xff]   ;;  %v412_v31 = vld [vmem:[#allocation5 + $0x94] ss:$8 sps:$4 sm:$0xff]   ;;  %v414_v32 = vld [vmem:[#allocation5 + $0x90] ss:$8 sps:$4 sm:$0xff]  }
  0x25   :  { %265 = vmatprep.subr.bf16.mxu0 %v379_v6  ;;  %v415_v33 = vld [vmem:[#allocation5 + $0x84] ss:$8 sps:$4 sm:$0xff]   ;;  %v417_v34 = vld [vmem:[#allocation5 + $0x80] ss:$8 sps:$4 sm:$0xff]   ;;  %v90_v37 = vshrl.u32 %v89_v36, 7  ;;  %vm311_vm0 = vcmask 1041408  }
  0x26   :  { %v488_v38 = vmov 1983009808   ;;  %v87_v42 = vld [vmem:[%s524_s2] sm:$0x3]  ;;  %vm312_vm1 = vcmask 11266   ;;  %s489_s24 = smov [#allocation7]  }
  0x27   :  { %v304_v39 = vunpack.c.l.s4 %v488_v38  ;;  %v91_v40 = vsub.s32 0, %v90_v37  ;;  %v95_v41 = vsub.s32 1, %v90_v37  ;;  %s321_s25 = sshll.u32 %s489_s24, 4  ;;  %vm313_vm2 = vmor %vm312_vm1, %vm311_vm0  ;;  %s322_s25 = int_to_ptr.vmem [resolvable:$true] %s321_s25 }
  0x28   :  { %266 = vmatpush1.bf16.msra.mxu0 %v381_v7  ;;  %s458_s2 = scalar_lea.vmem %s322_s25, 64  ;;  %p463_p11 = scmp.lt.s32.totalorder %s322_s25, %s322_s25 }
  0x29   :  { %267 = vmatprep.subr.bf16.mxu0 %v382_v8  ;;  %v305_v43 = vunpack.c.0.s8 %v304_v39  ;;  %v92_v44 = vrot.slane %v87_v42, %v91_v40  ;;  %v96_v45 = vrot.slane %v87_v42, %v95_v41  ;;  %p459_p10 = scmp.ne.s32.totalorder %s322_s25, %s458_s2  ;;  %p464_p12 = scmp.lt.s32.totalorder %s458_s2, %s458_s2 }
  0x2b   :  { %v308_v48 = vsub.s32 %v305_v43, %v90_v37  ;;  %p465_p13 = por %p464_p12, %p463_p11 }
  0x2c   :  { %268 = vmatpush1.bf16.msra.mxu0 %v384_v9 }
  0x2d   :  { %269 = vmatprep.subr.bf16.mxu0 %v385_v10  ;;  %p466_p0 = pnand %p465_p13, %p459_p10 }
  0x30   :  { %270 = vmatpush1.bf16.msra.mxu0 %v387_v11 }
  0x31   :  { %271 = vmatprep.subr.bf16.mxu0 %v388_v12 }
  0x34   :  { %272 = vmatpush1.bf16.msra.mxu0 %v390_v15 }
  0x35   :  { %273 = vmatprep.subr.bf16.mxu0 %v391_v16 }
  0x38   :  { %274 = vmatpush1.bf16.msra.mxu0 %v393_v18 }
  0x39   :  { %275 = vmatprep.subr.bf16.mxu0 %v394_v19 }
  0x3c   :  { %276 = vmatpush2.bf16.msra.mxu0 %v396_v20 }
  0x3d   :  { %277 = vmatprep.subr.bf16.mxu0 %v397_v21 }
  0x40   :  { %278 = vmatpush2.bf16.msra.mxu0 %v399_v22 }
  0x41   :  { %279 = vmatprep.subr.bf16.mxu0 %v400_v23 }
  0x44   :  { %280 = vmatpush2.bf16.msra.mxu0 %v402_v24 }
  0x45   :  { %281 = vmatprep.subr.bf16.mxu0 %v403_v25 }
  0x48   :  { %282 = vmatpush2.bf16.msra.mxu0 %v405_v26 }
  0x49   :  { %283 = vmatprep.subr.bf16.mxu0 %v406_v27 }
  0x4c   :  { %284 = vmatpush2.bf16.msra.mxu0 %v408_v28 }
  0x4d   :  { %285 = vmatprep.subr.bf16.mxu0 %v409_v29 }
  0x50   :  { %286 = vmatpush2.bf16.msra.mxu0 %v411_v30 }
  0x51   :  { %287 = vmatprep.subr.bf16.mxu0 %v412_v31 }
  0x54   :  { %288 = vmatpush2.bf16.msra.mxu0 %v414_v32 }
  0x55   :  { %289 = vmatprep.subr.bf16.mxu0 %v415_v33 }
  0x58   :  { %290 = vmatpush2.bf16.msra.mxu0 %v417_v34 }
  0x5b   :  { %292 = vmatmul.mubr.bf16.vlgmr.msra.gmra.mxu0 %v53_v35 }
 0x11b   :  { %v293_v46 = vpop.f32.mrf.mxu0 }
 0x11c   :  { %v294_v49 = vadd.f32 %v293_v46, %v92_v44 }
 0x11d   :  { %v295_v47 = vpop.f32.mrf.mxu0 }
 0x11e   :  { %v296_v50 = vadd.f32 %v295_v47, %v96_v45 }
 0x11f   :  { %v297_v51 = vpop.f32.mrf.mxu0 }
 0x120   :  { %v302_v52 = vcombine.low %v294_v49, %v296_v50 }
 0x121   :  { %v298_v53 = vpop.f32.mrf.mxu0 }
 0x122   :  { %v309_v54 = vrot.slane %v302_v52, %v308_v48 }
 0x124   :  { %314 = vst.msk [vmem:[#allocation7] sm:$0xf] %vm313_vm2, %v309_v54 }
 0x125   :  { %469 = shalt.err (!%p466_p0)
}
 0x126   :  { %324 = dma.vmem_to_hbm [thread:$0]  %s322_s25, 64, %s525_s3, [#allocation4]  }
 0x127   :  { %482 = dma.done.wait [#allocation4], 64  }
 0x128   :  { %483 = vsyncadd [#allocation4], 4294967232 }
 0x129   :  { %328 = vsyncpa [#allocation3], 1 }
 0x12a   :  { %329 = vsyncpa [#allocation6], 1 }
 0x12b   :  { %330 = vsyncpa [#allocation4], 1 }

</bundles_post_ra>
